<compile_context>
chip_gen: v7x
topology: tpu7x:2x2x1
jax: 0.10.0
libtpu: 0.0.40
codegen_flags: <defaults>
</compile_context>

<pallas_src>
import math

import jax
import jax.numpy as jnp
from jax import lax
from jax.experimental import pallas as pl
from jax.experimental.pallas import tpu as pltpu


def _round_up(x, m):
    return ((x + m - 1) // m) * m


def _vmem_capacity_bytes():
    try:
        info = pltpu.get_tpu_info()
        return int(getattr(info, "vmem_capacity_bytes", 64 * 1024 * 1024))
    except Exception:  # be conservative (v7x-sized per-TC budget) if query fails
        return 64 * 1024 * 1024


def _vmem_limit(footprint_bytes, ceiling_bytes):
    # Measured footprint + scheduling headroom, clamped to the chip ceiling.
    return int(min(ceiling_bytes, max(32 * 1024 * 1024,
                                      footprint_bytes + 16 * 1024 * 1024)))


# ---------------------------------------------------------------------------
# Prologue kernel: fm = feat @ W ; uv = fm @ [U | V | 0...]   (tiled over rows)
# ---------------------------------------------------------------------------
def gat_prologue_kernel(feat_ref, w_ref, uv_ref, fm_ref, uv_out_ref):
    # MXU matmul with f32 accumulation (operands may be bf16).
    fm = jnp.dot(feat_ref[...], w_ref[...], preferred_element_type=jnp.float32)
    fm_ref[...] = fm.astype(fm_ref.dtype)
    # Fused (Dout_pad, 128) projection: col 0 -> fm @ U, col 1 -> fm @ V,
    # cols 2..127 are zero padding so the store is lane-dense (no vst.msk).
    uv_out_ref[...] = jnp.dot(
        fm.astype(uv_ref.dtype), uv_ref[...],
        preferred_element_type=jnp.float32).astype(uv_out_ref.dtype)


# ---------------------------------------------------------------------------
# Attention kernel: fixed-shift softmax aggregation over k tiles of the mask.
# ---------------------------------------------------------------------------
def _make_attention_kernel(fm_resident):
    def kernel(mask_ref, fm_ref, u_ref, v_ref, out_ref, l_sc, acc_sc):
        q = pl.program_id(0)
        k = pl.program_id(1)
        tq, tk = mask_ref.shape

        @pl.when(k == 0)
        def _init():
            l_sc[...] = jnp.zeros_like(l_sc)
            acc_sc[...] = jnp.zeros_like(acc_sc)

        # Logits for this (TQ, TK) tile: att[j, i] = tanh(v[j] + u[i] + b).
        # (bias already folded into u_ref by the wrapper; f32 VPU/EUP math.)
        logits = jnp.tanh(v_ref[...] + u_ref[...])        # (TQ,1)+(1,TK)->(TQ,TK)

        # Mask: (sup + I) > 0  ==  (sup > 0) | (global_row == global_col).
        row = q * tq + lax.broadcasted_iota(jnp.int32, (tq, tk), 0)
        col = k * tk + lax.broadcasted_iota(jnp.int32, (tq, tk), 1)
        keep = (mask_ref[...] != 0) | (row == col)
        # tanh logits are bounded in [-1, 1] -> no running max needed; -30 fill
        # makes exp() ~1e-13 (negligible, no subnormals).  softmax is invariant
        # to the constant shift, so this matches the reference exactly.
        logits = jnp.where(keep, logits, jnp.float32(-30.0))

        p = jnp.exp(logits)                                # (TQ, TK) f32
        l_sc[...] += jnp.sum(p, axis=1, keepdims=True)

        if fm_resident:
            k0 = pl.multiple_of(k * tk, 128)
            fm_tile = fm_ref[pl.ds(k0, tk), :]             # slice resident fm
        else:
            fm_tile = fm_ref[...]                          # streamed k tile
        acc_sc[...] += jnp.dot(p.astype(fm_tile.dtype), fm_tile,
                               preferred_element_type=jnp.float32)

        @pl.when(k == pl.num_programs(1) - 1)
        def _finalize():
            inv_l = pl.reciprocal(l_sc[...], approx=True)  # EUP slot, ~free
            out_ref[...] = jnp.tanh(acc_sc[...] * inv_l).astype(out_ref.dtype)

    return kernel


# ---------------------------------------------------------------------------
# Wrapper
# ---------------------------------------------------------------------------
def gat_dense_forward(feat, sup, W, bias, U, V, *,
                      tq=None, tk=None, matmul_dtype=jnp.bfloat16,
                      fm_resident=None):
    f32 = jnp.float32
    n, din = feat.shape
    dout = W.shape[1]
    mm = jnp.dtype(matmul_dtype)
    mm_bytes = mm.itemsize

    vmem_cap = _vmem_capacity_bytes()
    is_small_vmem = vmem_cap <= 64 * 1024 * 1024          # v7x: 64 MiB per TC
    vmem_ceiling = (56 if is_small_vmem else 100) * 1024 * 1024
    resident_budget = (24 if is_small_vmem else 48) * 1024 * 1024

    dout_pad = _round_up(dout, 128)                        # lane-dense fm / out

    # --- decoupled tile selection ------------------------------------------
    n128 = _round_up(n, 128)
    if tk is None:
        tk = min(1024, n128)                               # big k tiles: fewer
    tk = max(128, _round_up(int(tk), 128))                 # grid steps, big DMAs
    if tq is None:
        tq = min(256, n128)
        # Prefer >= 2 q blocks so the "parallel" q axis can split across
        # v7x's two TensorCores.
        if _round_up(n, tq) // tq < 2:
            for cand in range(tq - 128, 127, -128):
                if _round_up(n, cand) // cand >= 2:
                    tq = cand
                    break
    tq = max(128, _round_up(int(tq), 128))

    n_pad_q = _round_up(n, tq)                             # query / output rows
    n_pad_k = _round_up(n, tk)                             # key columns
    n_pad_fm = max(n_pad_q, n_pad_k)                       # fm rows cover both
    nq = n_pad_q // tq
    nk = n_pad_k // tk

    # --- wrapper-side padding, directly in the dtype each kernel consumes ---
    # Zero padding is inert: padded fm rows are 0 and padded mask entries are 0,
    # so padded columns get logit -30 (weight ~1e-13 and fm == 0 anyway).
    feat_p = jnp.pad(feat.astype(mm), ((0, n_pad_fm - n), (0, 0)))
    w_p = jnp.pad(W.astype(mm), ((0, 0), (0, dout_pad - dout)))
    uv = jnp.pad(jnp.concatenate([U, V], axis=1).astype(mm),
                 ((0, dout_pad - dout), (0, 126)))          # (Dout_pad, 128)
    mask_p = jnp.pad((sup > 0).astype(jnp.int8),
                     ((0, n_pad_q - n), (0, n_pad_k - n)))  # int8 O(N^2) stream

    # --- prologue: fm and the fused (u, v) projections ----------------------
    t_pro = 256 if n_pad_fm % 256 == 0 else 128
    pro_bytes = 2 * (t_pro * din * mm_bytes + din * dout_pad * mm_bytes
                     + dout_pad * 128 * mm_bytes + t_pro * dout_pad * mm_bytes
                     + t_pro * 128 * 4)
    fm, uv_out = pl.pallas_call(
        gat_prologue_kernel,
        out_shape=(jax.ShapeDtypeStruct((n_pad_fm, dout_pad), mm),
                   jax.ShapeDtypeStruct((n_pad_fm, 128), f32)),
        grid_spec=pltpu.PrefetchScalarGridSpec(
            num_scalar_prefetch=0,
            grid=(n_pad_fm // t_pro,),
            in_specs=[
                pl.BlockSpec((t_pro, din), lambda i: (i, 0)),       # feat rows
                pl.BlockSpec((din, dout_pad), lambda i: (0, 0)),    # W (resident)
                pl.BlockSpec((dout_pad, 128), lambda i: (0, 0)),    # [U|V|0...]
            ],
            out_specs=(
                pl.BlockSpec((t_pro, dout_pad), lambda i: (i, 0)),  # fm
                pl.BlockSpec((t_pro, 128), lambda i: (i, 0)),       # (u, v, 0..)
            ),
        ),
        compiler_params=pltpu.CompilerParams(
            dimension_semantics=("parallel",),
            vmem_limit_bytes=_vmem_limit(pro_bytes, vmem_ceiling),
        ),
        cost_estimate=pl.CostEstimate(
            flops=2 * n_pad_fm * din * dout_pad + 2 * n_pad_fm * dout_pad * 128,
            transcendentals=0,
            bytes_accessed=mm_bytes * (n_pad_fm * din + din * dout_pad
                                       + n_pad_fm * dout_pad)
                           + 4 * n_pad_fm * 128,
        ),
    )(feat_p, w_p, uv)

    # Cheap O(N) re-layout in XLA: lane-dense u row (bias folded in) + v column.
    bias_val = jnp.asarray(bias, f32).reshape(-1)[0]
    u_row = (uv_out[:n_pad_k, 0] + bias_val).reshape(1, n_pad_k)  # (1, N_pad_k)
    v_col = uv_out[:n_pad_q, 1:2]                                 # (N_pad_q, 1)

    # --- main attention / aggregation kernel --------------------------------
    fm_2buf_bytes = 2 * n_pad_k * dout_pad * mm_bytes
    if fm_resident is None:
        fm_resident = fm_2buf_bytes <= resident_budget
    if fm_resident:
        fm_spec = pl.BlockSpec((n_pad_k, dout_pad), lambda q, k: (0, 0))
        fm_block_bytes = n_pad_k * dout_pad * mm_bytes
    else:
        fm_spec = pl.BlockSpec((tk, dout_pad), lambda q, k: (k, 0))
        fm_block_bytes = tk * dout_pad * mm_bytes

    attn_bytes = (2 * (tq * tk * 1                       # int8 mask tile
                       + fm_block_bytes                  # fm (resident or tile)
                       + tk * 4 + tq * 4                 # u row / v col tiles
                       + tq * dout_pad * 4)              # output tile
                  + tq * 4 + tq * dout_pad * 4)          # l / acc scratch

    out_pad = pl.pallas_call(
        _make_attention_kernel(fm_resident),
        out_shape=jax.ShapeDtypeStruct((n_pad_q, dout_pad), f32),
        grid_spec=pltpu.PrefetchScalarGridSpec(
            num_scalar_prefetch=0,
            grid=(nq, nk),
            in_specs=[
                pl.BlockSpec((tq, tk), lambda q, k: (q, k)),       # int8 mask
                fm_spec,                                           # fm
                pl.BlockSpec((1, tk), lambda q, k: (0, k)),        # u row tile
                pl.BlockSpec((tq, 1), lambda q, k: (q, 0)),        # v col tile
            ],
            out_specs=pl.BlockSpec((tq, dout_pad), lambda q, k: (q, 0)),
            scratch_shapes=[
                pltpu.VMEM((tq, 1), f32),            # running (unnorm.) row sum
                pltpu.VMEM((tq, dout_pad), f32),     # f32 accumulator
            ],
        ),
        compiler_params=pltpu.CompilerParams(
            dimension_semantics=("parallel", "arbitrary"),
            vmem_limit_bytes=_vmem_limit(attn_bytes, vmem_ceiling),
        ),
        cost_estimate=pl.CostEstimate(
            flops=2 * n_pad_q * n_pad_k * dout_pad + 8 * n_pad_q * n_pad_k,
            transcendentals=2 * n_pad_q * n_pad_k + n_pad_q * dout_pad,
            bytes_accessed=n_pad_q * n_pad_k
                           + mm_bytes * n_pad_k * dout_pad
                           + 4 * n_pad_q * dout_pad,
        ),
    )(mask_p, fm, u_row, v_col)

    return out_pad[:n, :dout]


# ---------------------------------------------------------------------------
# Reference + demo
# ---------------------------------------------------------------------------
def xavier_uniform(key, shape):
    fan_in, fan_out = shape[0], shape[1]
    bound = math.sqrt(6.0 / (fan_in + fan_out))
    return jax.random.uniform(key, shape, jnp.float32, minval=-bound, maxval=bound)


def reference_forward(feat, sup, W, bias, U, V):
    n = sup.shape[0]
    sup_aug = sup + jnp.eye(n, dtype=jnp.float32)
    fm = feat @ W
    u = fm @ U                      # (N, 1)
    v = fm @ V                      # (N, 1)
    att = jnp.tanh(v + u.T + jnp.asarray(bias).reshape(-1)[0])
    att = jnp.where(sup_aug > 0, att, -100.0)
    att = jax.nn.softmax(att, axis=1)
    return jnp.tanh(att @ fm)


if __name__ == "__main__":
    key = jax.random.PRNGKey(0)

    def run_case(n, din, dout, tq, tk, matmul_dtype, fm_resident, tol, case_key):
        k_feat, k_sup, k_w, k_u, k_v = jax.random.split(case_key, 5)
        feat = jax.random.normal(k_feat, (n, din), jnp.float32)
        # Synthetic non-negative "support" (normalized-adjacency-like) matrix.
        sup = (jax.random.uniform(k_sup, (n, n)) > 0.5).astype(jnp.float32) / n
        W = xavier_uniform(k_w, (din, dout))
        U = xavier_uniform(k_u, (dout, 1))
        V = xavier_uniform(k_v, (dout, 1))
        bias = jnp.zeros((1,), jnp.float32)   # map_bias: torch.zeros(1)

        out = gat_dense_forward(feat, sup, W, bias, U, V,
                                tq=tq, tk=tk, matmul_dtype=matmul_dtype,
                                fm_resident=fm_resident)
        out = jax.block_until_ready(out)

        ref = reference_forward(feat, sup, W, bias, U, V)
        assert out.shape == (n, dout)
        err = float(jnp.max(jnp.abs(out - ref)))
        assert err < tol, f"max abs err {err} >= {tol} (n={n})"
        return err

    k1, k2 = jax.random.split(key)
    # Small module-consistent shapes (single tile after padding), exact f32 MXU,
    # auto tile selection and the VMEM-resident fm path.
    run_case(8, 16, 32, None, None, jnp.float32, None, 5e-3, k1)
    # Multi-tile path: 300 nodes, tq=128 / tk=256 -> 3x2 grid exercising the
    # fixed-shift softmax accumulation with streamed (non-resident) fm, bf16
    # MXU operands and f32 accumulation.
    run_case(300, 16, 32, 128, 256, jnp.bfloat16, False, 5e-2, k2)

    print("KERNEL_OK")
</pallas_src>

<mosaic_0001>
module attributes {stable_mosaic.version = 11 : i64} {
  func.func @gat_prologue_kernel(%arg0: i32, %arg1: memref<128x16xf32, #tpu.memory_space<vmem>>, %arg2: memref<16x128xf32, #tpu.memory_space<vmem>>, %arg3: memref<128x128xf32, #tpu.memory_space<vmem>>, %arg4: memref<128x128xf32, #tpu.memory_space<vmem>>, %arg5: memref<128x128xf32, #tpu.memory_space<vmem>>) attributes {dimension_semantics = [#tpu.dimension_semantics<parallel>], iteration_bounds = array<i64: 1>, scalar_prefetch = 0 : i64, scratch_operands = 0 : i64, tpu.core_type = #tpu.core_type<tc>, window_params = [{transform_indices = @transform_0, window_bounds = array<i64: 128, 16>}, {pipeline_mode = #tpu.pipeline_mode<synchronous>, transform_indices = @transform_1, window_bounds = array<i64: 16, 128>}, {pipeline_mode = #tpu.pipeline_mode<synchronous>, transform_indices = @transform_2, window_bounds = array<i64: 128, 128>}, {transform_indices = @transform_3, window_bounds = array<i64: 128, 128>}, {transform_indices = @transform_4, window_bounds = array<i64: 128, 128>}]} {
    %c0 = arith.constant 0 : index
    %c0_0 = arith.constant 0 : index
    %0 = vector.load %arg1[%c0, %c0_0] : memref<128x16xf32, #tpu.memory_space<vmem>>, vector<128x16xf32>
    %c0_1 = arith.constant 0 : index
    %c0_2 = arith.constant 0 : index
    %1 = vector.load %arg2[%c0_1, %c0_2] : memref<16x128xf32, #tpu.memory_space<vmem>>, vector<16x128xf32>
    %cst = arith.constant dense<0.000000e+00> : vector<128x128xf32>
    %2 = tpu.matmul %0, %1, %cst {dimension_numbers = #tpu.dot_dimension_numbers<[1], [0], [0], [1], [0, 0, 1, 1], [], []>} : vector<128x16xf32>, vector<16x128xf32>, vector<128x128xf32> -> vector<128x128xf32>
    %c0_3 = arith.constant 0 : index
    %c0_4 = arith.constant 0 : index
    %3 = vector.load %arg4[%c0_3, %c0_4] : memref<128x128xf32, #tpu.memory_space<vmem>>, vector<128x128xf32>
    tpu.vector_store %arg4[%c0_3, %c0_4], %2 {strides = array<i32>} : memref<128x128xf32, #tpu.memory_space<vmem>>, vector<128x128xf32>,
    %c0_5 = arith.constant 0 : index
    %c0_6 = arith.constant 0 : index
    %4 = vector.load %arg3[%c0_5, %c0_6] : memref<128x128xf32, #tpu.memory_space<vmem>>, vector<128x128xf32>
    %cst_7 = arith.constant dense<0.000000e+00> : vector<128x128xf32>
    %5 = tpu.matmul %2, %4, %cst_7 {dimension_numbers = #tpu.dot_dimension_numbers<[1], [0], [0], [1], [0, 0, 1, 1], [], []>} : vector<128x128xf32>, vector<128x128xf32>, vector<128x128xf32> -> vector<128x128xf32>
    %c0_8 = arith.constant 0 : index
    %c0_9 = arith.constant 0 : index
    %6 = vector.load %arg5[%c0_8, %c0_9] : memref<128x128xf32, #tpu.memory_space<vmem>>, vector<128x128xf32>
    tpu.vector_store %arg5[%c0_8, %c0_9], %5 {strides = array<i32>} : memref<128x128xf32, #tpu.memory_space<vmem>>, vector<128x128xf32>,
    return
  }
  func.func @transform_0(%arg0: i32) -> (i32, i32) {
    %c0_i32 = arith.constant 0 : i32
    %c0_i32_0 = arith.constant 0 : i32
    return %arg0, %c0_i32 : i32, i32
  }
  func.func @transform_1(%arg0: i32) -> (i32, i32) {
    %c0_i32 = arith.constant 0 : i32
    %c0_i32_0 = arith.constant 0 : i32
    %c0_i32_1 = arith.constant 0 : i32
    return %c0_i32, %c0_i32_0 : i32, i32
  }
  func.func @transform_2(%arg0: i32) -> (i32, i32) {
    %c0_i32 = arith.constant 0 : i32
    %c0_i32_0 = arith.constant 0 : i32
    %c0_i32_1 = arith.constant 0 : i32
    return %c0_i32, %c0_i32_0 : i32, i32
  }
  func.func @transform_3(%arg0: i32) -> (i32, i32) {
    %c0_i32 = arith.constant 0 : i32
    %c0_i32_0 = arith.constant 0 : i32
    return %arg0, %c0_i32 : i32, i32
  }
  func.func @transform_4(%arg0: i32) -> (i32, i32) {
    %c0_i32 = arith.constant 0 : i32
    %c0_i32_0 = arith.constant 0 : i32
    return %arg0, %c0_i32 : i32, i32
  }
}

</mosaic_0001>

<bundles_post_ra>
// kernel: tpu_custom_call.1
= control target key start
LH: loop header
LB: loop body
LE: loop exit
PB: predicated region body
PF: predicated region fallthrough
CT: control target
= control target key end

     0   :  { %10 = vsyncpa [#allocation3], 0  ;;  %vm36_vm0 = vcmask 130048   ;;  %s886_s0 = inlined_call_operand.vmem [shape: f32[128,16], index: 0, kind: input, shape index: {}]   ;;  %s887_s1 = inlined_call_operand.vmem [shape: f32[16,128], index: 1, kind: input, shape index: {}]   ;;  %s888_s2 = inlined_call_operand.vmem [shape: f32[128,128], index: 2, kind: input, shape index: {}]   ;;  %s889_s3 = inlined_call_operand.hbm [shape: f32[128,128], index: 3, kind: output, shape index: {0}]   ;;  %s890_s4 = inlined_call_operand.hbm [shape: f32[128,128], index: 4, kind: output, shape index: {1}]  }
   0x1   :  { %v34_v0 = vld [vmem:[%s887_s1] sm:$0xff]  ;;  %v35_v1 = vld [vmem:[%s887_s1 + $0x8] sm:$0xff]  ;;  %v20_v5 = vld [vmem:[%s886_s0 + $0x10] sm:$0xff] }
   0x2   :  { %v18_v2 = vld [vmem:[%s886_s0] sm:$0xff]  ;;  %v605_v3 = vpack.c.bf16 %v35_v1, %v34_v0  ;;  %v19_v4 = vld [vmem:[%s886_s0 + $0x8] sm:$0xff]  ;;  %v248_v8 = vld [vmem:[%s888_s2 + $0x10] sm:$0xff] }
   0x3   :  { %525 = vmatprep.mubr.msk.f32.mxu0 %vm36_vm0, %v18_v2  ;;  %v246_v6 = vld [vmem:[%s888_s2] sm:$0xff]  ;;  %v247_v7 = vld [vmem:[%s888_s2 + $0x8] sm:$0xff]  ;;  %v249_v10 = vld [vmem:[%s888_s2 + $0x18] sm:$0xff] }
   0x4   :  { %606 = vmatprep.subr.bf16.mxu0 %v605_v3  ;;  %v609_v9 = vpack.c.bf16 %v247_v7, %v246_v6  ;;  %v21_v11 = vld [vmem:[%s886_s0 + $0x18] sm:$0xff]  ;;  %v613_v12 = vpack.c.bf16 %v249_v10, %v248_v8  ;;  %v250_v13 = vld [vmem:[%s888_s2 + $0x20] sm:$0xff]  ;;  %v251_v14 = vld [vmem:[%s888_s2 + $0x28] sm:$0xff] }
   0x5   :  { %608 = vmatpush3.bf16.msra.mxu0 %v605_v3  ;;  %v22_v15 = vld [vmem:[%s886_s0 + $0x20] sm:$0xff]  ;;  %v617_v16 = vpack.c.bf16 %v251_v14, %v250_v13 }
   0x6   :  { %610 = vmatprep.subr.bf16.mxu0 %v609_v9  ;;  %641 = vmatprep.subr.bf16.mxu1 %v609_v9 }
   0x7   :  { %649 = vmatpush3.bf16.msra.mxu1 %v609_v9 }
   0x8   :  { %526 = vmatmul.mubr.msk.f32.vlgmr.msra.gmra.mrb[0].mxu0 %vm36_vm0, %v19_v4 }
   0x9   :  { %528 = vmatprep.mubr.msk.f32.mxu0 %vm36_vm0, %v20_v5  ;;  %612 = vmatpush3.bf16.msra.mxu0 %v609_v9 }
   0xa   :  { %614 = vmatprep.subr.bf16.mxu0 %v613_v12 }
   0xc   :  { %529 = vmatmul.mubr.msk.f32.gmra.mrb[2].mxu0 %vm36_vm0, %v21_v11 }
   0xd   :  { %11 = vsyncpa [#allocation5], 0  ;;  %531 = vmatprep.mubr.msk.f32.mxu0 %vm36_vm0, %v22_v15  ;;  %v23_v17 = vld [vmem:[%s886_s0 + $0x28] sm:$0xff]  ;;  %v252_v18 = vld [vmem:[%s888_s2 + $0x30] sm:$0xff]  ;;  %642 = vmatprep.subr.bf16.mxu1 %v613_v12 }
   0xe   :  { %v253_v19 = vld [vmem:[%s888_s2 + $0x38] sm:$0xff]  ;;  %v24_v20 = vld [vmem:[%s886_s0 + $0x30] sm:$0xff]  ;;  %616 = vmatpush3.bf16.msra.mxu0 %v613_v12  ;;  %650 = vmatpush3.bf16.msra.mxu1 %v613_v12  ;;  %v254_v23 = vld [vmem:[%s888_s2 + $0x40] sm:$0xff] }
   0xf   :  { %618 = vmatprep.subr.bf16.mxu0 %v617_v16  ;;  %v621_v21 = vpack.c.bf16 %v253_v19, %v252_v18  ;;  %v25_v22 = vld [vmem:[%s886_s0 + $0x38] sm:$0xff]  ;;  %v255_v24 = vld [vmem:[%s888_s2 + $0x48] sm:$0xff]  ;;  %643 = vmatprep.subr.bf16.mxu1 %v617_v16  ;;  %v26_v25 = vld [vmem:[%s886_s0 + $0x40] sm:$0xff] }
  0x10   :  { %532 = vmatmul.mubr.msk.f32.gmra.mrb[4].mxu0 %vm36_vm0, %v23_v17  ;;  %v625_v26 = vpack.c.bf16 %v255_v24, %v254_v23  ;;  %v27_v27 = vld [vmem:[%s886_s0 + $0x48] sm:$0xff]  ;;  %v256_v28 = vld [vmem:[%s888_s2 + $0x50] sm:$0xff]  ;;  %v257_v29 = vld [vmem:[%s888_s2 + $0x58] sm:$0xff] }
  0x11   :  { %534 = vmatprep.mubr.msk.f32.mxu0 %vm36_vm0, %v24_v20  ;;  %v28_v30 = vld [vmem:[%s886_s0 + $0x50] sm:$0xff]  ;;  %v629_v31 = vpack.c.bf16 %v257_v29, %v256_v28  ;;  %v29_v32 = vld [vmem:[%s886_s0 + $0x58] sm:$0xff]  ;;  %v258_v33 = vld [vmem:[%s888_s2 + $0x60] sm:$0xff] }
  0x12   :  { %620 = vmatpush3.bf16.msra.mxu0 %v617_v16  ;;  %651 = vmatpush3.bf16.msra.mxu1 %v617_v16  ;;  %v259_v34 = vld [vmem:[%s888_s2 + $0x68] sm:$0xff]  ;;  %v30_v35 = vld [vmem:[%s886_s0 + $0x60] sm:$0xff]  ;;  %v260_v38 = vld [vmem:[%s888_s2 + $0x70] sm:$0xff] }
  0x13   :  { %622 = vmatprep.subr.bf16.mxu0 %v621_v21  ;;  %644 = vmatprep.subr.bf16.mxu1 %v621_v21  ;;  %v633_v36 = vpack.c.bf16 %v259_v34, %v258_v33  ;;  %v31_v37 = vld [vmem:[%s886_s0 + $0x68] sm:$0xff]  ;;  %v261_v39 = vld [vmem:[%s888_s2 + $0x78] sm:$0xff]  ;;  %v32_v40 = vld [vmem:[%s886_s0 + $0x70] sm:$0xff] }
  0x14   :  { %535 = vmatmul.mubr.msk.f32.gmra.mrb[6].mxu0 %vm36_vm0, %v25_v22  ;;  %v637_v41 = vpack.c.bf16 %v261_v39, %v260_v38  ;;  %v33_v42 = vld [vmem:[%s886_s0 + $0x78] sm:$0xff]  ;;  %s709_s0 = smov [#allocation2]  }
  0x15   :  { %537 = vmatprep.mubr.msk.f32.mxu0 %vm36_vm0, %v26_v25  ;;  %s428_s2 = sshll.u32 %s709_s0, 4  ;;  %s429_s2 = int_to_ptr.vmem [resolvable:$true] %s428_s2 }
  0x16   :  { %624 = vmatpush3.bf16.msra.mxu0 %v621_v21  ;;  %652 = vmatpush3.bf16.msra.mxu1 %v621_v21  ;;  %s661_s28 = scalar_lea.vmem %s429_s2, 2048  ;;  %p666_p1 = scmp.lt.s32.totalorder %s429_s2, %s429_s2 }
  0x17   :  { %626 = vmatprep.subr.bf16.mxu0 %v625_v26  ;;  %645 = vmatprep.subr.bf16.mxu1 %v625_v26  ;;  %p662_p0 = scmp.ne.s32.totalorder %s429_s2, %s661_s28  ;;  %p667_p2 = scmp.lt.s32.totalorder %s661_s28, %s661_s28 }
  0x18   :  { %538 = vmatmul.mubr.msk.f32.gmra.mrb[8].mxu0 %vm36_vm0, %v27_v27 }
  0x19   :  { %540 = vmatprep.mubr.msk.f32.mxu0 %vm36_vm0, %v28_v30  ;;  %p668_p3 = por %p667_p2, %p666_p1 }
  0x1a   :  { %628 = vmatpush3.bf16.msra.mxu0 %v625_v26  ;;  %653 = vmatpush3.bf16.msra.mxu1 %v625_v26 }
  0x1b   :  { %630 = vmatprep.subr.bf16.mxu0 %v629_v31  ;;  %646 = vmatprep.subr.bf16.mxu1 %v629_v31  ;;  %p669_p4 = pnand %p668_p3, %p662_p0 }
  0x1c   :  { %541 = vmatmul.mubr.msk.f32.gmra.mrb[10].mxu0 %vm36_vm0, %v29_v32 }
  0x1d   :  { %543 = vmatprep.mubr.msk.f32.mxu0 %vm36_vm0, %v30_v35 }
  0x1e   :  { %632 = vmatpush3.bf16.msra.mxu0 %v629_v31  ;;  %654 = vmatpush3.bf16.msra.mxu1 %v629_v31 }
  0x1f   :  { %634 = vmatprep.subr.bf16.mxu0 %v633_v36  ;;  %647 = vmatprep.subr.bf16.mxu1 %v633_v36 }
  0x20   :  { %544 = vmatmul.mubr.msk.f32.gmra.mrb[12].mxu0 %vm36_vm0, %v31_v37 }
  0x21   :  { %546 = vmatprep.mubr.msk.f32.mxu0 %vm36_vm0, %v32_v40 }
  0x22   :  { %636 = vmatpush3.bf16.msra.mxu0 %v633_v36  ;;  %655 = vmatpush3.bf16.msra.mxu1 %v633_v36 }
  0x23   :  { %638 = vmatprep.subr.bf16.mxu0 %v637_v41  ;;  %648 = vmatprep.subr.bf16.mxu1 %v637_v41 }
  0x24   :  { %547 = vmatmul.mubr.msk.f32.gmra.mrb[14].mxu0 %vm36_vm0, %v33_v42 }
  0x26   :  { %640 = vmatpush3.bf16.msra.mxu0 %v637_v41  ;;  %656 = vmatpush3.bf16.msra.mxu1 %v637_v41 }
  0xdb   :  { %v527_v43 = vpop.f32.mrb[0].mxu0 }
  0xdc   :  { %231 = vst [vmem:[#allocation2 + $0x8] sm:$0xff] %v527_v43  ;;  %v151_v44 = vpop.f32.mrb[1].mxu0 }
  0xdd   :  { %230 = vst [vmem:[#allocation2] sm:$0xff] %v151_v44  ;;  %581 = vmatprep.mubr.f32.mxu0 %v151_v44 }
  0xde   :  { %582 = vmatmul.mubr.f32.vlgmr.msra.gmra.mrb[16].mxu0 %v527_v43 }
  0xdf   :  { %v530_v45 = vpop.f32.mrb[2].mxu0 }
  0xe0   :  { %233 = vst [vmem:[#allocation2 + $0x18] sm:$0xff] %v530_v45  ;;  %v161_v46 = vpop.f32.mrb[3].mxu0 }
  0xe1   :  { %232 = vst [vmem:[#allocation2 + $0x10] sm:$0xff] %v161_v46  ;;  %584 = vmatprep.mubr.f32.mxu0 %v161_v46 }
  0xe2   :  { %585 = vmatmul.mubr.f32.gmra.mrb[18].mxu0 %v530_v45 }
  0xe3   :  { %v533_v47 = vpop.f32.mrb[4].mxu0 }
  0xe4   :  { %235 = vst [vmem:[#allocation2 + $0x28] sm:$0xff] %v533_v47  ;;  %v171_v48 = vpop.f32.mrb[5].mxu0 }
  0xe5   :  { %234 = vst [vmem:[#allocation2 + $0x20] sm:$0xff] %v171_v48  ;;  %587 = vmatprep.mubr.f32.mxu0 %v171_v48 }
  0xe6   :  { %588 = vmatmul.mubr.f32.gmra.mrb[20].mxu0 %v533_v47 }
  0xe7   :  { %v536_v49 = vpop.f32.mrb[6].mxu0 }
  0xe8   :  { %237 = vst [vmem:[#allocation2 + $0x38] sm:$0xff] %v536_v49  ;;  %v181_v50 = vpop.f32.mrb[7].mxu0 }
  0xe9   :  { %236 = vst [vmem:[#allocation2 + $0x30] sm:$0xff] %v181_v50  ;;  %590 = vmatprep.mubr.f32.mxu1 %v181_v50 }
  0xea   :  { %591 = vmatmul.mubr.f32.vlgmr.msra.gmra.mrb[0].mxu1 %v536_v49 }
  0xeb   :  { %v539_v51 = vpop.f32.mrb[8].mxu0 }
  0xec   :  { %239 = vst [vmem:[#allocation2 + $0x48] sm:$0xff] %v539_v51  ;;  %v191_v52 = vpop.f32.mrb[9].mxu0 }
  0xed   :  { %238 = vst [vmem:[#allocation2 + $0x40] sm:$0xff] %v191_v52  ;;  %593 = vmatprep.mubr.f32.mxu1 %v191_v52 }
  0xee   :  { %594 = vmatmul.mubr.f32.gmra.mrb[2].mxu1 %v539_v51 }
  0xef   :  { %v542_v53 = vpop.f32.mrb[10].mxu0 }
  0xf0   :  { %241 = vst [vmem:[#allocation2 + $0x58] sm:$0xff] %v542_v53  ;;  %v201_v54 = vpop.f32.mrb[11].mxu0 }
  0xf1   :  { %240 = vst [vmem:[#allocation2 + $0x50] sm:$0xff] %v201_v54  ;;  %596 = vmatprep.mubr.f32.mxu1 %v201_v54 }
  0xf2   :  { %597 = vmatmul.mubr.f32.gmra.mrb[4].mxu1 %v542_v53 }
  0xf3   :  { %v545_v55 = vpop.f32.mrb[12].mxu0 }
  0xf4   :  { %243 = vst [vmem:[#allocation2 + $0x68] sm:$0xff] %v545_v55  ;;  %v211_v56 = vpop.f32.mrb[13].mxu0 }
  0xf5   :  { %242 = vst [vmem:[#allocation2 + $0x60] sm:$0xff] %v211_v56  ;;  %599 = vmatprep.mubr.f32.mxu1 %v211_v56 }
  0xf6   :  { %600 = vmatmul.mubr.f32.gmra.mrb[6].mxu1 %v545_v55 }
  0xf7   :  { %v548_v57 = vpop.f32.mrb[14].mxu0 }
  0xf8   :  { %245 = vst [vmem:[#allocation2 + $0x78] sm:$0xff] %v548_v57  ;;  %v221_v58 = vpop.f32.mrb[15].mxu0 }
  0xf9   :  { %244 = vst [vmem:[#allocation2 + $0x70] sm:$0xff] %v221_v58  ;;  %602 = vmatprep.mubr.f32.mxu1 %v221_v58 }
  0xfa   :  { %603 = vmatmul.mubr.f32.gmra.mrb[8].mxu1 %v548_v57 }
  0xfb   :  { %672 = shalt.err (!%p669_p4)
}
  0xfc   :  { %s673_s5 = scalar_lea.hbm %s889_s3, 2048 }
  0xfd   :  { %p674_p5 = scmp.ne.s32.totalorder %s889_s3, %s673_s5  ;;  %p677_p6 = scmp.lt.u32.totalorder %s673_s5, %s889_s3 }
  0xff   :  { %p679_p7 = pnand %p677_p6, %p674_p5 }
 0x101   :  { %682 = shalt.err (!%p679_p7)
}
 0x102   :  { %s710_s10 = smov 128   ;;  %s711_s11 = smov 8  }
 0x103   :  { %434 = dma.vmem_to_hbm [thread:$0]  %s429_s2, 2048, %s889_s3, [#allocation3], %s710_s10, %s710_s10, %s711_s11  }
 0x104   :  { %s712_s3 = smov [#allocation4]  }
 0x105   :  { %s440_s14 = sshll.u32 %s712_s3, 4  ;;  %s441_s14 = int_to_ptr.vmem [resolvable:$true] %s440_s14 }
 0x106   :  { %s683_s15 = scalar_lea.vmem %s441_s14, 2048  ;;  %p688_p9 = scmp.lt.s32.totalorder %s441_s14, %s441_s14 }
 0x107   :  { %p684_p8 = scmp.ne.s32.totalorder %s441_s14, %s683_s15  ;;  %p689_p10 = scmp.lt.s32.totalorder %s683_s15, %s683_s15 }
 0x109   :  { %p690_p11 = por %p689_p10, %p688_p9 }
 0x10b   :  { %p691_p12 = pnand %p690_p11, %p684_p8 }
 0x1b1   :  { %v583_v59 = vpop.f32.mrb[16].mxu0 }
 0x1b2   :  { %408 = vst [vmem:[#allocation4 + $0x8] sm:$0xff] %v583_v59  ;;  %v328_v60 = vpop.f32.mrb[17].mxu0 }
 0x1b3   :  { %407 = vst [vmem:[#allocation4] sm:$0xff] %v328_v60 }
 0x1b5   :  { %v586_v61 = vpop.f32.mrb[18].mxu0 }
 0x1b6   :  { %410 = vst [vmem:[#allocation4 + $0x18] sm:$0xff] %v586_v61  ;;  %v338_v62 = vpop.f32.mrb[19].mxu0 }
 0x1b7   :  { %409 = vst [vmem:[#allocation4 + $0x10] sm:$0xff] %v338_v62 }
 0x1b9   :  { %v589_v63 = vpop.f32.mrb[20].mxu0 }
 0x1ba   :  { %412 = vst [vmem:[#allocation4 + $0x28] sm:$0xff] %v589_v63  ;;  %v348_v0 = vpop.f32.mrb[21].mxu0 }
 0x1bb   :  { %411 = vst [vmem:[#allocation4 + $0x20] sm:$0xff] %v348_v0 }
 0x1bd   :  { %v592_v1 = vpop.f32.mrb[0].mxu1 }
 0x1be   :  { %414 = vst [vmem:[#allocation4 + $0x38] sm:$0xff] %v592_v1  ;;  %v358_v2 = vpop.f32.mrb[1].mxu1 }
 0x1bf   :  { %413 = vst [vmem:[#allocation4 + $0x30] sm:$0xff] %v358_v2 }
 0x1c1   :  { %v595_v3 = vpop.f32.mrb[2].mxu1 }
 0x1c2   :  { %416 = vst [vmem:[#allocation4 + $0x48] sm:$0xff] %v595_v3  ;;  %v368_v4 = vpop.f32.mrb[3].mxu1 }
 0x1c3   :  { %415 = vst [vmem:[#allocation4 + $0x40] sm:$0xff] %v368_v4 }
 0x1c5   :  { %v598_v5 = vpop.f32.mrb[4].mxu1 }
 0x1c6   :  { %418 = vst [vmem:[#allocation4 + $0x58] sm:$0xff] %v598_v5  ;;  %v378_v6 = vpop.f32.mrb[5].mxu1 }
 0x1c7   :  { %417 = vst [vmem:[#allocation4 + $0x50] sm:$0xff] %v378_v6 }
 0x1c9   :  { %v601_v7 = vpop.f32.mrb[6].mxu1 }
 0x1ca   :  { %420 = vst [vmem:[#allocation4 + $0x68] sm:$0xff] %v601_v7  ;;  %v388_v8 = vpop.f32.mrb[7].mxu1 }
 0x1cb   :  { %419 = vst [vmem:[#allocation4 + $0x60] sm:$0xff] %v388_v8 }
 0x1cd   :  { %v604_v9 = vpop.f32.mrb[8].mxu1 }
 0x1ce   :  { %422 = vst [vmem:[#allocation4 + $0x78] sm:$0xff] %v604_v9  ;;  %v398_v10 = vpop.f32.mrb[9].mxu1 }
 0x1cf   :  { %421 = vst [vmem:[#allocation4 + $0x70] sm:$0xff] %v398_v10 }
 0x1d0   :  { %694 = shalt.err (!%p691_p12)
}
 0x1d1   :  { %s695_s18 = scalar_lea.hbm %s890_s4, 2048 }
 0x1d2   :  { %p696_p13 = scmp.ne.s32.totalorder %s890_s4, %s695_s18  ;;  %p699_p0 = scmp.lt.u32.totalorder %s695_s18, %s890_s4 }
 0x1d4   :  { %p701_p1 = pnand %p699_p0, %p696_p13 }
 0x1d6   :  { %704 = shalt.err (!%p701_p1)
}
 0x1d7   :  { %446 = dma.vmem_to_hbm [thread:$0]  %s441_s14, 2048, %s890_s4, [#allocation5], %s710_s10, %s710_s10, %s711_s11  }
 0x1d8   :  { %705 = dma.done.wait [#allocation3], 2048  }
 0x1d9   :  { %706 = vsyncadd [#allocation3], 4294965248 }
 0x1da   :  { %707 = dma.done.wait [#allocation5], 2048  }
 0x1db   :  { %708 = vsyncadd [#allocation5], 4294965248 }
 0x1dc   :  { %453 = vsyncpa [#allocation3], 1 }
 0x1dd   :  { %454 = vsyncpa [#allocation5], 1 }

</bundles_post_ra>
